<compile_context>
chip_gen: v6e
topology: v6e:2x2x1
jax: 0.10.0
libtpu: 0.0.40
codegen_flags: <defaults>
</compile_context>

<pallas_src>
import functools

import jax
import jax.numpy as jnp
from jax.experimental import pallas as pl
from jax.experimental.pallas import tpu as pltpu


# ---------------------------------------------------------------------------
# Kernel 1: fused nearest-x2 upsample + 3x3 conv (pad 1, no bias) + BN + ReLU
# ---------------------------------------------------------------------------
def _up2_conv_bn_relu_kernel(x_ref, wq_ref, scale_ref, shift_ref, o_ref):
    # x_ref:     (1, Hx, Wx, Cin)     small pre-upsample tile (one batch elem)
    # wq_ref:    (2, 6*Cin, Co)       polyphase weights per output col parity
    # scale_ref: (1, Co)   gamma / sqrt(var + eps)
    # shift_ref: (1, Co)   beta - mean * scale
    # o_ref:     (1, 2*Hx, Wx, 2*Co)  packed: o[0,h,b,q*Co+co] = out[h,2b+q,co]
    _, Hx, Wx, Cin = x_ref.shape
    Co = o_ref.shape[-1] // 2
    H2 = 2 * Hx

    x = x_ref[0]                                          # (Hx, Wx, Cin)

    # nearest x2 along rows (major axis -> pure vreg placement, cheap)
    x2h = jnp.concatenate([x[:, None], x[:, None]], axis=1)
    x2h = x2h.reshape(H2, Wx, Cin)                        # row r -> x[r // 2]

    # zero halo in VMEM: 1 coarse col left/right, 1 fine row top/bottom
    zc = jnp.zeros((H2, 1, Cin), x.dtype)
    xq = jnp.concatenate([zc, x2h, zc], axis=1)           # (H2, Wx+2, Cin)
    zr = jnp.zeros((1, Wx + 2, Cin), x.dtype)
    xq = jnp.concatenate([zr, xq, zr], axis=0)            # (H2+2, Wx+2, Cin)

    scale = scale_ref[...]
    shift = shift_ref[...]

    outs = []
    for q in (0, 1):                                      # output col parity
        # im2col: 3 row taps x 2 effective col taps -> one K = 6*Cin matmul
        pieces = []
        for kh in range(3):
            for v in range(2):
                p = xq[kh:kh + H2, q + v:q + v + Wx, :]
                pieces.append(p.reshape(H2 * Wx, Cin))
        patch = jnp.concatenate(pieces, axis=-1)          # (H2*Wx, 6*Cin)
        acc = jnp.dot(patch, wq_ref[q],
                      preferred_element_type=jnp.float32)
        acc = acc * scale + shift                         # BatchNorm (eval)
        outs.append(jnp.maximum(acc, 0.0))                # ReLU
    out = jnp.concatenate(outs, axis=-1)                  # (H2*Wx, 2*Co)
    o_ref[...] = out.reshape(1, H2, Wx, 2 * Co).astype(o_ref.dtype)


def upsample2_conv3x3_bn_relu(x_nhwc, w, scale, shift):
    """Upsample(nearest,x2) -> conv3x3(stride1,pad1,no bias) -> BN(eval) -> ReLU."""
    N, Hx, Wx, Cin = x_nhwc.shape
    Co = w.shape[-1]
    # Polyphase weights over output-column parity (w is (kh, kw, ci, co)):
    #   q=0: cols (b, b+1) of padded x with weights [w0, w1+w2]
    #   q=1: cols (b+1, b+2)               weights [w0+w1, w2]
    w_q0 = jnp.stack([w[:, 0], w[:, 1] + w[:, 2]], axis=1)        # (3,2,Cin,Co)
    w_q1 = jnp.stack([w[:, 0] + w[:, 1], w[:, 2]], axis=1)        # (3,2,Cin,Co)
    wq = jnp.stack([w_q0, w_q1], axis=0).reshape(2, 6 * Cin, Co)
    scale2 = scale.reshape(1, Co).astype(jnp.float32)
    shift2 = shift.reshape(1, Co).astype(jnp.float32)

    out_packed = pl.pallas_call(
        _up2_conv_bn_relu_kernel,
        out_shape=jax.ShapeDtypeStruct((N, 2 * Hx, Wx, 2 * Co), x_nhwc.dtype),
        grid=(N,),
        in_specs=[
            pl.BlockSpec((1, Hx, Wx, Cin), lambda n: (n, 0, 0, 0)),
            pl.BlockSpec((2, 6 * Cin, Co), lambda n: (0, 0, 0)),
            pl.BlockSpec((1, Co), lambda n: (0, 0)),
            pl.BlockSpec((1, Co), lambda n: (0, 0)),
        ],
        out_specs=pl.BlockSpec((1, 2 * Hx, Wx, 2 * Co), lambda n: (n, 0, 0, 0)),
        compiler_params=pltpu.CompilerParams(
            dimension_semantics=("parallel",)),
    )(x_nhwc, wq, scale2, shift2)
    # Packed (q, co) lane axis matches the interleaved memory order exactly,
    # so this reshape back to standard NHWC is a free bitcast in XLA.
    return out_packed.reshape(N, 2 * Hx, 2 * Wx, Co)


# ---------------------------------------------------------------------------
# Kernel 2: 3x3 conv over a fused channel-concat of inputs + BN + ReLU
# ---------------------------------------------------------------------------
def _concat_conv_bn_relu_kernel(*refs, chans):
    n_in = len(chans)
    x_refs = refs[:n_in]
    w_ref, scale_ref, shift_ref, o_ref = refs[n_in:]
    _, H, W, Co = o_ref.shape

    # zero-pad each input tile by 1 pixel (halo built in VMEM, not HBM)
    padded = []
    for r, c in zip(x_refs, chans):
        t = r[0]                                          # (H, W, c)
        zc = jnp.zeros((H, 1, c), t.dtype)
        t = jnp.concatenate([zc, t, zc], axis=1)          # (H, W+2, c)
        zr = jnp.zeros((1, W + 2, c), t.dtype)
        t = jnp.concatenate([zr, t, zr], axis=0)          # (H+2, W+2, c)
        padded.append(t)

    # single im2col patch, K = 9 * sum(chans); piece order matches
    # w.reshape(9*Cin, Co) with Cin in concatenated-channel order.
    pieces = []
    for kh in range(3):
        for kw in range(3):
            for t, c in zip(padded, chans):
                pieces.append(t[kh:kh + H, kw:kw + W, :].reshape(H * W, c))
    patch = jnp.concatenate(pieces, axis=-1)              # (H*W, 9*Cin)
    acc = jnp.dot(patch, w_ref[...], preferred_element_type=jnp.float32)
    out = jnp.maximum(acc * scale_ref[...] + shift_ref[...], 0.0)
    o_ref[...] = out.reshape(1, H, W, Co).astype(o_ref.dtype)


def conv3x3_bn_relu_fused_concat(inputs, w, scale, shift):
    """conv3x3(stride1,pad1,no bias) over channel-concat(inputs) + BN + ReLU.

    `inputs` is a list of NHWC arrays with the same (N, H, W); the channel
    concat is fused into the kernel (split contraction), so the concatenated
    tensor is never materialized in HBM.
    """
    N, H, W = inputs[0].shape[:3]
    chans = tuple(int(t.shape[-1]) for t in inputs)
    Cin = sum(chans)
    Co = w.shape[-1]
    w_mat = w.reshape(9 * Cin, Co)
    scale2 = scale.reshape(1, Co).astype(jnp.float32)
    shift2 = shift.reshape(1, Co).astype(jnp.float32)

    in_specs = [pl.BlockSpec((1, H, W, c), lambda n: (n, 0, 0, 0))
                for c in chans]
    in_specs += [
        pl.BlockSpec((9 * Cin, Co), lambda n: (0, 0)),
        pl.BlockSpec((1, Co), lambda n: (0, 0)),
        pl.BlockSpec((1, Co), lambda n: (0, 0)),
    ]
    return pl.pallas_call(
        functools.partial(_concat_conv_bn_relu_kernel, chans=chans),
        out_shape=jax.ShapeDtypeStruct((N, H, W, Co), inputs[0].dtype),
        grid=(N,),
        in_specs=in_specs,
        out_specs=pl.BlockSpec((1, H, W, Co), lambda n: (n, 0, 0, 0)),
        compiler_params=pltpu.CompilerParams(
            dimension_semantics=("parallel",)),
    )(*inputs, w_mat, scale2, shift2)


# ---------------------------------------------------------------------------
# DecodeBlock.forward (n_divs=1, act_layer=relu, eval-mode BatchNorm)
# ---------------------------------------------------------------------------
def decode_block(x_nchw, y_nchw, w1, scale1, shift1, w2, scale2, shift2,
                 scale_factor=2):
    x = jnp.transpose(x_nchw, (0, 2, 3, 1))   # NCHW -> NHWC (boundary glue)
    y = jnp.transpose(y_nchw, (0, 2, 3, 1))
    hy, wy = y.shape[1], y.shape[2]

    # layer1: Upsample + conv3x3 + BN + ReLU, fully fused in one kernel
    if scale_factor == 2:
        x = upsample2_conv3x3_bn_relu(x, w1, scale1, shift1)
    elif scale_factor == 1:
        x = conv3x3_bn_relu_fused_concat([x], w1, scale1, shift1)
    else:
        # TODO(synk): general integer scale factors.
        raise NotImplementedError("scale_factor must be 1 or 2")

    # crop to y's spatial size (identity slice -> elided by XLA when equal)
    x = x[:, :hy, :wy, :]

    # layer2: conv3x3 over cat([x, y], channels) + BN + ReLU; concat is fused
    # into the kernel (w2's input-channel axis spans [x channels, y channels]).
    out = conv3x3_bn_relu_fused_concat([x, y], w2, scale2, shift2)

    return jnp.transpose(out, (0, 3, 1, 2))   # back to NCHW


# ---------------------------------------------------------------------------
# Pure-XLA reference mirroring the PyTorch forward (for a numeric self-check)
# ---------------------------------------------------------------------------
def _reference_decode_block(x, y, w1, s1, b1, w2, s2, b2, scale_factor=2):
    def conv3x3(t_nhwc, w):
        return jax.lax.conv_general_dilated(
            t_nhwc, w, window_strides=(1, 1), padding=((1, 1), (1, 1)),
            dimension_numbers=("NHWC", "HWIO", "NHWC"),
            precision=jax.lax.Precision.HIGHEST)

    xt = jnp.transpose(x, (0, 2, 3, 1))
    yt = jnp.transpose(y, (0, 2, 3, 1))
    if scale_factor > 1:
        xt = jnp.repeat(jnp.repeat(xt, scale_factor, axis=1),
                        scale_factor, axis=2)
    xt = jnp.maximum(conv3x3(xt, w1) * s1 + b1, 0.0)
    xt = xt[:, :yt.shape[1], :yt.shape[2], :]
    zt = jnp.concatenate([xt, yt], axis=-1)
    zt = jnp.maximum(conv3x3(zt, w2) * s2 + b2, 0.0)
    return jnp.transpose(zt, (0, 3, 1, 2))


if __name__ == "__main__":
    key = jax.random.PRNGKey(0)
    N = 2
    x_planes, y_planes, planes = 4, 4, 8
    Hx, Wx = 8, 8            # x spatial (pre-upsample)
    Hy, Wy = 16, 16          # y spatial (== upsampled x spatial)
    eps = 1e-5

    k1, k2, k3, k4, k5, k6, k7, k8 = jax.random.split(key, 8)

    # Inputs (PyTorch NCHW convention)
    x = jax.random.normal(k1, (N, x_planes, Hx, Wx), jnp.float32)
    y = jax.random.normal(k2, (N, y_planes, Hy, Wy), jnp.float32)

    # Conv weights: PyTorch (out,in,kh,kw) -> stored here as (kh,kw,in,out);
    # w2's input-channel axis is ordered [x channels, y channels].
    w1 = jax.random.normal(k3, (3, 3, x_planes, planes), jnp.float32) * 0.1
    w2 = jax.random.normal(k4, (3, 3, planes + y_planes, planes),
                           jnp.float32) * 0.1

    # BatchNorm params (eval mode), deterministic init
    gamma1 = 1.0 + 0.01 * jax.random.normal(k5, (planes,), jnp.float32)
    beta1 = 0.01 * jax.random.normal(k6, (planes,), jnp.float32)
    gamma2 = 1.0 + 0.01 * jax.random.normal(k7, (planes,), jnp.float32)
    beta2 = 0.01 * jax.random.normal(k8, (planes,), jnp.float32)
    rmean1 = jnp.zeros((planes,), jnp.float32)
    rvar1 = jnp.ones((planes,), jnp.float32)
    rmean2 = jnp.zeros((planes,), jnp.float32)
    rvar2 = jnp.ones((planes,), jnp.float32)

    scale1 = gamma1 / jnp.sqrt(rvar1 + eps)
    shift1 = beta1 - rmean1 * scale1
    scale2 = gamma2 / jnp.sqrt(rvar2 + eps)
    shift2 = beta2 - rmean2 * scale2

    out = decode_block(x, y, w1, scale1, shift1, w2, scale2, shift2)
    out = jax.block_until_ready(out)
    assert out.shape == (N, planes, Hy, Wy), out.shape

    ref = _reference_decode_block(x, y, w1, scale1, shift1, w2, scale2, shift2)
    ref = jax.block_until_ready(ref)
    max_err = float(jnp.max(jnp.abs(out - ref)))
    assert max_err < 5e-2, f"mismatch vs reference: max abs err {max_err}"

    print("KERNEL_OK")
</pallas_src>

<mosaic_0001>
module attributes {stable_mosaic.version = 11 : i64} {
  func.func @_up2_conv_bn_relu_kernel(%arg0: i32, %arg1: memref<1x8x8x4xf32, #tpu.memory_space<vmem>>, %arg2: memref<2x24x8xf32, #tpu.memory_space<vmem>>, %arg3: memref<1x8xf32, #tpu.memory_space<vmem>>, %arg4: memref<1x8xf32, #tpu.memory_space<vmem>>, %arg5: memref<1x16x8x16xf32, #tpu.memory_space<vmem>>) attributes {dimension_semantics = [#tpu.dimension_semantics<parallel>], iteration_bounds = array<i64: 2>, scalar_prefetch = 0 : i64, scratch_operands = 0 : i64, tpu.core_type = #tpu.core_type<tc>, window_params = [{transform_indices = @transform_0, window_bounds = array<i64: 1, 8, 8, 4>}, {pipeline_mode = #tpu.pipeline_mode<synchronous>, transform_indices = @transform_1, window_bounds = array<i64: 2, 24, 8>}, {pipeline_mode = #tpu.pipeline_mode<synchronous>, transform_indices = @transform_2, window_bounds = array<i64: 1, 8>}, {pipeline_mode = #tpu.pipeline_mode<synchronous>, transform_indices = @transform_3, window_bounds = array<i64: 1, 8>}, {transform_indices = @transform_4, window_bounds = array<i64: 1, 16, 8, 16>}]} {
    %c0 = arith.constant 0 : index
    %c0_0 = arith.constant 0 : index
    %c0_1 = arith.constant 0 : index
    %c0_2 = arith.constant 0 : index
    %0 = vector.load %arg1[%c0, %c0_0, %c0_1, %c0_2] : memref<1x8x8x4xf32, #tpu.memory_space<vmem>>, vector<1x8x8x4xf32>
    %1 = vector.shape_cast %0 : vector<1x8x8x4xf32> to vector<8x8x4xf32>
    %2 = vector.shape_cast %1 : vector<8x8x4xf32> to vector<8x1x8x4xf32>
    %3 = vector.shape_cast %1 : vector<8x8x4xf32> to vector<8x1x8x4xf32>
    %4 = tpu.concatenate %2, %3 in 1 : vector<8x1x8x4xf32>, vector<8x1x8x4xf32> -> vector<8x2x8x4xf32>
    %5 = vector.shape_cast %4 : vector<8x2x8x4xf32> to vector<16x8x4xf32>
    %cst = arith.constant 0.000000e+00 : f32
    %6 = vector.broadcast %cst : f32 to vector<16x1x4xf32>
    %7 = tpu.concatenate %6, %5, %6 in 1 : vector<16x1x4xf32>, vector<16x8x4xf32>, vector<16x1x4xf32> -> vector<16x10x4xf32>
    %cst_3 = arith.constant 0.000000e+00 : f32
    %8 = vector.broadcast %cst_3 : f32 to vector<1x10x4xf32>
    %9 = tpu.concatenate %8, %7, %8 in 0 : vector<1x10x4xf32>, vector<16x10x4xf32>, vector<1x10x4xf32> -> vector<18x10x4xf32>
    %c0_4 = arith.constant 0 : index
    %c0_5 = arith.constant 0 : index
    %10 = vector.load %arg3[%c0_4, %c0_5] : memref<1x8xf32, #tpu.memory_space<vmem>>, vector<1x8xf32>
    %c0_6 = arith.constant 0 : index
    %c0_7 = arith.constant 0 : index
    %11 = vector.load %arg4[%c0_6, %c0_7] : memref<1x8xf32, #tpu.memory_space<vmem>>, vector<1x8xf32>
    %12 = vector.extract_strided_slice %9 {offsets = [0, 0, 0], sizes = [16, 8, 4], strides = [1, 1, 1]} : vector<18x10x4xf32> to vector<16x8x4xf32>
    %13 = vector.shape_cast %12 : vector<16x8x4xf32> to vector<128x4xf32>
    %14 = vector.extract_strided_slice %9 {offsets = [0, 1, 0], sizes = [16, 8, 4], strides = [1, 1, 1]} : vector<18x10x4xf32> to vector<16x8x4xf32>
    %15 = vector.shape_cast %14 : vector<16x8x4xf32> to vector<128x4xf32>
    %16 = vector.extract_strided_slice %9 {offsets = [1, 0, 0], sizes = [16, 8, 4], strides = [1, 1, 1]} : vector<18x10x4xf32> to vector<16x8x4xf32>
    %17 = vector.shape_cast %16 : vector<16x8x4xf32> to vector<128x4xf32>
    %18 = vector.extract_strided_slice %9 {offsets = [1, 1, 0], sizes = [16, 8, 4], strides = [1, 1, 1]} : vector<18x10x4xf32> to vector<16x8x4xf32>
    %19 = vector.shape_cast %18 : vector<16x8x4xf32> to vector<128x4xf32>
    %20 = vector.extract_strided_slice %9 {offsets = [2, 0, 0], sizes = [16, 8, 4], strides = [1, 1, 1]} : vector<18x10x4xf32> to vector<16x8x4xf32>
    %21 = vector.shape_cast %20 : vector<16x8x4xf32> to vector<128x4xf32>
    %22 = vector.extract_strided_slice %9 {offsets = [2, 1, 0], sizes = [16, 8, 4], strides = [1, 1, 1]} : vector<18x10x4xf32> to vector<16x8x4xf32>
    %23 = vector.shape_cast %22 : vector<16x8x4xf32> to vector<128x4xf32>
    %24 = tpu.concatenate %13, %15, %17, %19, %21, %23 in 1 : vector<128x4xf32>, vector<128x4xf32>, vector<128x4xf32>, vector<128x4xf32>, vector<128x4xf32>, vector<128x4xf32> -> vector<128x24xf32>
    %c0_8 = arith.constant 0 : index
    %c0_9 = arith.constant 0 : index
    %c0_10 = arith.constant 0 : index
    %25 = vector.load %arg2[%c0_8, %c0_9, %c0_10] : memref<2x24x8xf32, #tpu.memory_space<vmem>>, vector<1x24x8xf32>
    %26 = vector.shape_cast %25 : vector<1x24x8xf32> to vector<24x8xf32>
    %cst_11 = arith.constant dense<0.000000e+00> : vector<128x8xf32>
    %27 = tpu.matmul %24, %26, %cst_11 {dimension_numbers = #tpu.dot_dimension_numbers<[1], [0], [0], [1], [0, 0, 1, 1], [], []>} : vector<128x24xf32>, vector<24x8xf32>, vector<128x8xf32> -> vector<128x8xf32>
    %28 = vector.broadcast %10 : vector<1x8xf32> to vector<128x8xf32>
    %29 = arith.mulf %27, %28 : vector<128x8xf32>
    %30 = vector.broadcast %11 : vector<1x8xf32> to vector<128x8xf32>
    %31 = arith.addf %29, %30 : vector<128x8xf32>
    %cst_12 = arith.constant 0.000000e+00 : f32
    %32 = vector.broadcast %cst_12 : f32 to vector<128x8xf32>
    %33 = arith.maximumf %31, %32 : vector<128x8xf32>
    %34 = vector.extract_strided_slice %9 {offsets = [0, 1, 0], sizes = [16, 8, 4], strides = [1, 1, 1]} : vector<18x10x4xf32> to vector<16x8x4xf32>
    %35 = vector.shape_cast %34 : vector<16x8x4xf32> to vector<128x4xf32>
    %36 = vector.extract_strided_slice %9 {offsets = [0, 2, 0], sizes = [16, 8, 4], strides = [1, 1, 1]} : vector<18x10x4xf32> to vector<16x8x4xf32>
    %37 = vector.shape_cast %36 : vector<16x8x4xf32> to vector<128x4xf32>
    %38 = vector.extract_strided_slice %9 {offsets = [1, 1, 0], sizes = [16, 8, 4], strides = [1, 1, 1]} : vector<18x10x4xf32> to vector<16x8x4xf32>
    %39 = vector.shape_cast %38 : vector<16x8x4xf32> to vector<128x4xf32>
    %40 = vector.extract_strided_slice %9 {offsets = [1, 2, 0], sizes = [16, 8, 4], strides = [1, 1, 1]} : vector<18x10x4xf32> to vector<16x8x4xf32>
    %41 = vector.shape_cast %40 : vector<16x8x4xf32> to vector<128x4xf32>
    %42 = vector.extract_strided_slice %9 {offsets = [2, 1, 0], sizes = [16, 8, 4], strides = [1, 1, 1]} : vector<18x10x4xf32> to vector<16x8x4xf32>
    %43 = vector.shape_cast %42 : vector<16x8x4xf32> to vector<128x4xf32>
    %44 = vector.extract_strided_slice %9 {offsets = [2, 2, 0], sizes = [16, 8, 4], strides = [1, 1, 1]} : vector<18x10x4xf32> to vector<16x8x4xf32>
    %45 = vector.shape_cast %44 : vector<16x8x4xf32> to vector<128x4xf32>
    %46 = tpu.concatenate %35, %37, %39, %41, %43, %45 in 1 : vector<128x4xf32>, vector<128x4xf32>, vector<128x4xf32>, vector<128x4xf32>, vector<128x4xf32>, vector<128x4xf32> -> vector<128x24xf32>
    %c1 = arith.constant 1 : index
    %c0_13 = arith.constant 0 : index
    %c0_14 = arith.constant 0 : index
    %47 = vector.load %arg2[%c1, %c0_13, %c0_14] : memref<2x24x8xf32, #tpu.memory_space<vmem>>, vector<1x24x8xf32>
    %48 = vector.shape_cast %47 : vector<1x24x8xf32> to vector<24x8xf32>
    %cst_15 = arith.constant dense<0.000000e+00> : vector<128x8xf32>
    %49 = tpu.matmul %46, %48, %cst_15 {dimension_numbers = #tpu.dot_dimension_numbers<[1], [0], [0], [1], [0, 0, 1, 1], [], []>} : vector<128x24xf32>, vector<24x8xf32>, vector<128x8xf32> -> vector<128x8xf32>
    %50 = vector.broadcast %10 : vector<1x8xf32> to vector<128x8xf32>
    %51 = arith.mulf %49, %50 : vector<128x8xf32>
    %52 = vector.broadcast %11 : vector<1x8xf32> to vector<128x8xf32>
    %53 = arith.addf %51, %52 : vector<128x8xf32>
    %cst_16 = arith.constant 0.000000e+00 : f32
    %54 = vector.broadcast %cst_16 : f32 to vector<128x8xf32>
    %55 = arith.maximumf %53, %54 : vector<128x8xf32>
    %56 = tpu.concatenate %33, %55 in 1 : vector<128x8xf32>, vector<128x8xf32> -> vector<128x16xf32>
    %57 = vector.shape_cast %56 : vector<128x16xf32> to vector<1x16x8x16xf32>
    %c0_17 = arith.constant 0 : index
    %c0_18 = arith.constant 0 : index
    %c0_19 = arith.constant 0 : index
    %c0_20 = arith.constant 0 : index
    %58 = vector.load %arg5[%c0_17, %c0_18, %c0_19, %c0_20] : memref<1x16x8x16xf32, #tpu.memory_space<vmem>>, vector<1x16x8x16xf32>
    tpu.vector_store %arg5[%c0_17, %c0_18, %c0_19, %c0_20], %57 {strides = array<i32>} : memref<1x16x8x16xf32, #tpu.memory_space<vmem>>, vector<1x16x8x16xf32>,
    return
  }
  func.func @transform_0(%arg0: i32) -> (i32, i32, i32, i32) {
    %c0_i32 = arith.constant 0 : i32
    %c0_i32_0 = arith.constant 0 : i32
    %c0_i32_1 = arith.constant 0 : i32
    %c0_i32_2 = arith.constant 0 : i32
    return %arg0, %c0_i32, %c0_i32_0, %c0_i32_1 : i32, i32, i32, i32
  }
  func.func @transform_1(%arg0: i32) -> (i32, i32, i32) {
    %c0_i32 = arith.constant 0 : i32
    %c0_i32_0 = arith.constant 0 : i32
    %c0_i32_1 = arith.constant 0 : i32
    %c0_i32_2 = arith.constant 0 : i32
    return %c0_i32, %c0_i32_0, %c0_i32_1 : i32, i32, i32
  }
  func.func @transform_2(%arg0: i32) -> (i32, i32) {
    %c0_i32 = arith.constant 0 : i32
    %c0_i32_0 = arith.constant 0 : i32
    %c0_i32_1 = arith.constant 0 : i32
    return %c0_i32, %c0_i32_0 : i32, i32
  }
  func.func @transform_3(%arg0: i32) -> (i32, i32) {
    %c0_i32 = arith.constant 0 : i32
    %c0_i32_0 = arith.constant 0 : i32
    %c0_i32_1 = arith.constant 0 : i32
    return %c0_i32, %c0_i32_0 : i32, i32
  }
  func.func @transform_4(%arg0: i32) -> (i32, i32, i32, i32) {
    %c0_i32 = arith.constant 0 : i32
    %c0_i32_0 = arith.constant 0 : i32
    %c0_i32_1 = arith.constant 0 : i32
    %c0_i32_2 = arith.constant 0 : i32
    return %arg0, %c0_i32, %c0_i32_0, %c0_i32_1 : i32, i32, i32, i32
  }
}

</mosaic_0001>

<bundles_post_ra>
// kernel: tpu_custom_call.1
= control target key start
LH: loop header
LB: loop body
LE: loop exit
PB: predicated region body
PF: predicated region fallthrough
CT: control target
= control target key end

     0   :  { %9 = vsyncpa [#allocation3], 0  ;;  %s2410_s0 = inlined_call_operand.vmem [shape: f32[2,8,8,4], index: 0, kind: input, shape index: {}]   ;;  %s2411_s1 = inlined_call_operand.vmem [shape: f32[2,24,8], index: 1, kind: input, shape index: {}]   ;;  %s2412_s2 = inlined_call_operand.vmem [shape: f32[1,8], index: 2, kind: input, shape index: {}]   ;;  %s2413_s3 = inlined_call_operand.vmem [shape: f32[1,8], index: 3, kind: input, shape index: {}]   ;;  %s2414_s4 = inlined_call_operand.hbm [shape: f32[2,16,8,16], index: 4, kind: output, shape index: {}]  }
   0x1   :  { %11 = vsyncpa [#allocation3 + $0x1], 0  ;;  %s1700_s15 = smov 0   ;;  %s1702_s16 = smov 0  }
   0x2   :  { %s1704_s17 = smov 0   ;;  %s1706_s18 = smov 0  }
   0x3 LB: > { %s1721_s19 = sadd.s32 4294967295, %s1665_s18   ;;  %s1410_s20 = sadd.s32 4294967294, %s1665_s18   ;;  %s1665_s18 = sphi %s1706_s18, %s2420_s18   ;;  %s1661_s17 = sphi %s1704_s17, %s2419_s17   ;;  %s1657_s16 = sphi %s1702_s16, %s2418_s16   ;;  %s1653_s15 = sphi %s1700_s15, %s2417_s15  }
   0x4   : > { %s1725_s21 = sadd.s32 1, %s1665_s18   ;;  %s113_s22 = sadd.s32 1, %s1661_s17 }
   0x5   : > { %s110_s23 = ssub.s32 %s1665_s18, %s1725_s21  ;;  %p123_p0 = scmp.ne.s32.totalorder %s1661_s17, %s1657_s16 }
   0x6   : > { %p111_p1 = scmp.eq.s32.totalorder %s110_s23, 0  ;;  %p124_p2 = scmp.eq.s32.totalorder %s1721_s19, 1 }
   0x7   : > { %p129_p3 = scmp.ne.s32.totalorder %s1657_s16, %s1653_s15  ;;  %p130_p4 = scmp.eq.s32.totalorder %s1410_s20, 1 }
   0x8   : > { %s1736_s24 = scalar_select %p111_p1, %s1661_s17, %s113_s22  }
   0x9   : > { %p1738_p5 = por %p124_p2, %p123_p0  ;;  %p1742_p6 = por %p130_p4, %p129_p3 }
   0xa   : > { %p1413_p7 = scmp.ge.s32.totalorder %s1665_s18, 1  ;;  %p165_p8 = scmp.lt.s32.totalorder %s1665_s18, 3 }
   0xc   : > { %p166_p9 = pnand %p1413_p7, %p165_p8 }
   0xd   : > { %p191_p10 = scmp.lt.s32.totalorder (!%p166_p9), %s1721_s19, 1  ;;  %s1668_s28 = smov (!%p166_p9), 4  }
   0xe   : > { %169 = sbr.rel (%p166_p9) target bundleno = 558 (0x22e), region = 36  ;;  %s1669_s11 = smov (!%p166_p9), 8  }
   0xf   : > { %s1670_s14 = smov (!%p166_p9), 16   ;;  %s1671_s20 = smov (!%p166_p9), 12  }
  0x10   : > { %s1672_s22 = smov (!%p166_p9), 20   ;;  %s188_s10 = sand.u32 (!%p166_p9), 1, %s1657_s16  }
  0x11   : > { %s1414_s12 = sshll.u32 (!%p166_p9), %s188_s10, 7  ;;  %s1673_s30 = smov (!%p166_p9), [#allocation2]  }
  0x12   : > { %s2283_s13 = scalar_lea.vmem (!%p166_p9), [#allocation2], %s1414_s12  ;;  %s1609_s5 = sshll.u32 (!%p166_p9), %s1673_s30, 4  ;;  %s1610_s5 = int_to_ptr.vmem [resolvable:$false] %s1609_s5 }
  0x13   : > { %v1667_v0 = vmov 0.0   ;;  %s192_s27 = scalar_select %p191_p10, %s1721_s19, 1  ;;  %vm228_vm0 = vcmask 1040384   ;;  %vm764_vm1 = vcmask 1045504   ;;  %vm264_vm2 = vcmask 1046528   ;;  %v1437_v8 = vld [vmem:[%s2411_s1 + $0x28] sm:$0xff] }
  0x14   : > { %v1750_v1 = vrot.slane %v1667_v0, 2  ;;  %1529 = vmatprep.subr.mxu1 %v1437_v8  ;;  %v1436_v17 = vld [vmem:[%s2411_s1 + $0x20] sm:$0xff]  ;;  %v1435_v18 = vld [vmem:[%s2411_s1 + $0x18] sm:$0xff]  ;;  %vm429_vm3 = vcmask 31744   ;;  %vm439_vm4 = vcmask 64512   ;;  %vm456_vm5 = vcmask 97280  }
  0x15   : > { %s1459_s29 = sshll.u32 %s192_s27, 6  ;;  %1530 = vmatpush3.msra.mxu1 %v1437_v8  ;;  %vm473_vm6 = vcmask 130048   ;;  %vm490_vm7 = vcmask 162816   ;;  %vm510_vm8 = vcmask 195584  }
  0x16   : > { %791 = vrot.lane.b32.xlu0 %v1750_v1, %s1668_s28  ;;  %s1758_s6 = scalar_lea.vmem %s2410_s0, %s1459_s29  ;;  %1531 = vmatprep.subr.mxu1 %v1436_v17 }
  0x17   : > { %v196_v2 = vld [vmem:[%s1758_s6] sm:$0xff]  ;;  %v197_v3 = vld [vmem:[%s1758_s6 + $0x8] sm:$0xff]  ;;  %v198_v21 = vld [vmem:[%s1758_s6 + $0x10] sm:$0xff]  ;;  %1532 = vmatpush3.msra.mxu1 %v1436_v17 }
  0x18   : > { %v212_v4 = vrot.slane %v196_v2, 7  ;;  %v213_v5 = vrot.slane %v197_v3, 7  ;;  %1533 = vmatprep.subr.mxu1 %v1435_v18  ;;  %v214_v22 = vrot.slane %v198_v21, 7  ;;  %v203_v23 = vld [vmem:[%s1758_s6 + $0x38] sm:$0xff]  ;;  %v200_v51 = vld [vmem:[%s1758_s6 + $0x20] sm:$0xff]  ;;  %v201_v59 = vld [vmem:[%s1758_s6 + $0x28] sm:$0xff] }
  0x19   : > { %1534 = vmatpush3.msra.mxu1 %v1435_v18  ;;  %v219_v27 = vrot.slane %v203_v23, 7  ;;  %v199_v33 = vld [vmem:[%s1758_s6 + $0x18] sm:$0xff]  ;;  %v216_v55 = vrot.slane %v200_v51, 7  ;;  %v217_v2 = vrot.slane %v201_v59, 7 }
  0x1a   : > { %v1763_v6 = vsel %vm228_vm0, 0.0, %v212_v4  ;;  %v237_v7 = vsel %vm228_vm0, %v212_v4, 0.0  ;;  %v1772_v13 = vsel %vm228_vm0, 0.0, %v213_v5  ;;  %v238_v14 = vsel %vm228_vm0, %v213_v5, 0.0 }
  0x1b   : > { %v268_v9 = vrot.slane %v237_v7, 1  ;;  %v767_v10 = vrot.slane %v1763_v6, 2  ;;  %v768_v11 = vrot.slane %v237_v7, 2  ;;  %v267_v12 = vrot.slane %v1763_v6, 1 }
  0x1c   : > { %v270_v19 = vrot.slane %v1772_v13, 1  ;;  %v271_v20 = vrot.slane %v238_v14, 1  ;;  %v770_v25 = vrot.slane %v1772_v13, 2  ;;  %v771_v26 = vrot.slane %v238_v14, 2 }
  0x1d   : > { %v769_v15 = vsel %vm764_vm1, %v767_v10, %v768_v11  ;;  %v1777_v16 = vsel %vm264_vm2, %v267_v12, %v268_v9  ;;  %v1802_v28 = vsel %vm228_vm0, 0.0, %v214_v22  ;;  %v239_v30 = vsel %vm228_vm0, %v214_v22, 0.0  ;;  %v202_v10 = vld [vmem:[%s1758_s6 + $0x30] sm:$0xff]  ;;  %s1611_s6 = scalar_lea.vmem %s1610_s5, 4096 }
  0x1e   : > { %793 = vrot.lane.b32.xlu0 %v769_v15, %s1668_s28  ;;  %818 = vrot.lane.b32.xlu1 %v1777_v16, %s1669_s11  ;;  %v1795_v24 = vsel %vm264_vm2, %v270_v19, %v271_v20  ;;  %v772_v29 = vsel %vm764_vm1, %v770_v25, %v771_v26  ;;  %v1807_v31 = vsel %vm228_vm0, 0.0, %v219_v27  ;;  %v244_v32 = vsel %vm228_vm0, %v219_v27, 0.0 }
  0x1f   : > { %v288_v34 = vrot.slane %v1807_v31, 1  ;;  %v289_v35 = vrot.slane %v244_v32, 1  ;;  %v788_v36 = vrot.slane %v1807_v31, 2  ;;  %v789_v37 = vrot.slane %v244_v32, 2 }
  0x20   : > { %v274_v38 = vrot.slane %v239_v30, 1  ;;  %v773_v39 = vrot.slane %v1802_v28, 2  ;;  %v774_v40 = vrot.slane %v239_v30, 2  ;;  %v273_v41 = vrot.slane %v1802_v28, 1  ;;  %v508_v30 = vld [vmem:[%s2411_s1 + $0x8] sm:$0xff] }
  0x21   : > { %v1819_v42 = vsel %vm264_vm2, %v288_v34, %v289_v35  ;;  %v1822_v43 = vsel %vm764_vm1, %v788_v36, %v789_v37  ;;  %v215_v44 = vrot.slane %v199_v33, 7  ;;  %v1851_v57 = vsel %vm228_vm0, 0.0, %v216_v55 }
  0x22   : > { %866 = vrot.lane.b32.xlu0 %v1777_v16, %s1670_s14  ;;  %842 = vrot.lane.b32.xlu1 %v769_v15, %s1671_s20  ;;  %v775_v45 = vsel %vm764_vm1, %v773_v39, %v774_v40  ;;  %v1828_v46 = vsel %vm264_vm2, %v273_v41, %v274_v38  ;;  %v241_v58 = vsel %vm228_vm0, %v216_v55, 0.0  ;;  %v779_v61 = vrot.slane %v1851_v57, 2 }
  0x23   : > { %v1831_v47 = vsel %vm228_vm0, 0.0, %v215_v44  ;;  %v240_v48 = vsel %vm228_vm0, %v215_v44, 0.0  ;;  %v280_v60 = vrot.slane %v241_v58, 1  ;;  %v780_v62 = vrot.slane %v241_v58, 2 }
  0x24   : > { %v276_v49 = vrot.slane %v1831_v47, 1  ;;  %v277_v50 = vrot.slane %v240_v48, 1  ;;  %v776_v53 = vrot.slane %v1831_v47, 2  ;;  %v777_v54 = vrot.slane %v240_v48, 2 }
  0x25   : > { %v279_v63 = vrot.slane %v1851_v57, 1  ;;  %v781_v3 = vsel %vm764_vm1, %v779_v61, %v780_v62  ;;  %v1867_v5 = vsel %vm228_vm0, 0.0, %v217_v2  ;;  %v242_v7 = vsel %vm228_vm0, %v217_v2, 0.0 }
  0x26   : > { %893 = vrot.lane.b32.xlu0 %v769_v15, %s1672_s22  ;;  %868 = vrot.lane.b32.xlu1 %v1795_v24, %s1670_s14  ;;  %v1843_v52 = vsel %vm264_vm2, %v276_v49, %v277_v50  ;;  %v778_v56 = vsel %vm764_vm1, %v776_v53, %v777_v54  ;;  %v282_v8 = vrot.slane %v1867_v5, 1  ;;  %v283_v9 = vrot.slane %v242_v7, 1 }
  0x27   : > { %v1864_v4 = vsel %vm264_vm2, %v279_v63, %v280_v60  ;;  %v782_v12 = vrot.slane %v1867_v5, 2  ;;  %v783_v14 = vrot.slane %v242_v7, 2  ;;  %v218_v15 = vrot.slane %v202_v10, 7 }
  0x28   : > { %v1879_v11 = vsel %vm264_vm2, %v282_v8, %v283_v9  ;;  %v1915_v27 = vrot.slane %v1667_v0, 1 }
  0x29   : > { %v784_v17 = vsel %vm764_vm1, %v782_v12, %v783_v14  ;;  %v1887_v18 = vsel %vm228_vm0, 0.0, %v218_v15  ;;  %v243_v19 = vsel %vm228_vm0, %v218_v15, 0.0 }
  0x2a   : > { %820 = vrot.lane.b32.xlu0 %v1795_v24, %s1669_s11  ;;  %795 = vrot.lane.b32.xlu1 %v772_v29, %s1668_s28  ;;  %v286_v20 = vrot.slane %v243_v19, 1  ;;  %v785_v21 = vrot.slane %v1887_v18, 2  ;;  %v786_v22 = vrot.slane %v243_v19, 2  ;;  %v285_v23 = vrot.slane %v1887_v18, 1 }
  0x2c   : > { %v787_v25 = vsel %vm764_vm1, %v785_v21, %v786_v22  ;;  %v1899_v26 = vsel %vm264_vm2, %v285_v23, %v286_v20 }
  0x2e   : > { %844 = vrot.lane.b32.xlu0 %v772_v29, %s1671_s20  ;;  %895 = vrot.lane.b32.xlu1 %v772_v29, %s1672_s22  ;;  %v509_v29 = vld [vmem:[%s2411_s1 + $0x10] sm:$0xff] }
  0x2f   : > { %1499 = vmatprep.subr.mxu0 %v509_v29 }
  0x30   : > { %1500 = vmatpush3.msra.mxu0 %v509_v29 }
  0x31   : > { %1501 = vmatprep.subr.mxu0 %v508_v30 }
  0x32   : > { %797 = vrot.lane.b32.xlu0 %v775_v45, %s1668_s28  ;;  %870 = vrot.lane.b32.xlu1 %v1828_v46, %s1670_s14 }
  0x33   : > { %1502 = vmatpush3.msra.mxu0 %v508_v30 }
  0x36   : > { %897 = vrot.lane.b32.xlu0 %v775_v45, %s1672_s22  ;;  %822 = vrot.lane.b32.xlu1 %v1828_v46, %s1669_s11 }
  0x3a   : > { %872 = vrot.lane.b32.xlu0 %v1843_v52, %s1670_s14  ;;  %846 = vrot.lane.b32.xlu1 %v775_v45, %s1671_s20 }
  0x3e   : > { %824 = vrot.lane.b32.xlu0 %v1843_v52, %s1669_s11  ;;  %799 = vrot.lane.b32.xlu1 %v778_v56, %s1668_s28 }
  0x42   : > { %848 = vrot.lane.b32.xlu0 %v778_v56, %s1671_s20  ;;  %899 = vrot.lane.b32.xlu1 %v778_v56, %s1672_s22 }
  0x46   : > { %801 = vrot.lane.b32.xlu0 %v781_v3, %s1668_s28  ;;  %874 = vrot.lane.b32.xlu1 %v1864_v4, %s1670_s14 }
  0x4a   : > { %901 = vrot.lane.b32.xlu0 %v781_v3, %s1672_s22  ;;  %826 = vrot.lane.b32.xlu1 %v1864_v4, %s1669_s11 }
  0x4e   : > { %876 = vrot.lane.b32.xlu0 %v1879_v11, %s1670_s14  ;;  %850 = vrot.lane.b32.xlu1 %v781_v3, %s1671_s20 }
  0x52   : > { %828 = vrot.lane.b32.xlu0 %v1879_v11, %s1669_s11  ;;  %803 = vrot.lane.b32.xlu1 %v784_v17, %s1668_s28 }
  0x56   : > { %852 = vrot.lane.b32.xlu0 %v784_v17, %s1671_s20  ;;  %903 = vrot.lane.b32.xlu1 %v784_v17, %s1672_s22 }
  0x5a   : > { %805 = vrot.lane.b32.xlu0 %v787_v25, %s1668_s28  ;;  %878 = vrot.lane.b32.xlu1 %v1899_v26, %s1670_s14 }
  0x5e   : > { %905 = vrot.lane.b32.xlu0 %v787_v25, %s1672_s22  ;;  %830 = vrot.lane.b32.xlu1 %v1899_v26, %s1669_s11 }
  0x62   : > { %880 = vrot.lane.b32.xlu0 %v1819_v42, %s1670_s14  ;;  %854 = vrot.lane.b32.xlu1 %v787_v25, %s1671_s20 }
  0x66   : > { %832 = vrot.lane.b32.xlu0 %v1819_v42, %s1669_s11  ;;  %807 = vrot.lane.b32.xlu1 %v1822_v43, %s1668_s28 }
  0x6a   : > { %856 = vrot.lane.b32.xlu0 %v1822_v43, %s1671_s20  ;;  %907 = vrot.lane.b32.xlu1 %v1822_v43, %s1672_s22 }
  0x6e   : > { %882 = vrot.lane.b32.xlu1 %v1915_v27, %s1670_s14  ;;  %909 = vrot.lane.b32.xlu0 %v1750_v1, %s1672_s22  ;;  %v507_v1 = vld [vmem:[%s2411_s1] sm:$0xff] }
  0x6f   : > { %1503 = vmatprep.subr.mxu0 %v507_v1 }
  0x70   : > { %1504 = vmatpush3.msra.mxu0 %v507_v1 }
  0x72   : > { %300 = vrot.lane.b32.xlu1 %v1915_v27, %s1668_s28  ;;  %302 = vrot.lane.b32.xlu0 %v1777_v16, %s1668_s28 }
  0x76   : > { %327 = vrot.lane.b32.xlu1 %v1763_v6, %s1669_s11  ;;  %351 = vrot.lane.b32.xlu0 %v1777_v16, %s1671_s20 }
  0x7a   : > { %375 = vrot.lane.b32.xlu1 %v1763_v6, %s1670_s14  ;;  %377 = vrot.lane.b32.xlu0 %v1772_v13, %s1670_s14 }
  0x7e   : > { %402 = vrot.lane.b32.xlu1 %v1777_v16, %s1672_s22  ;;  %304 = vrot.lane.b32.xlu0 %v1795_v24, %s1668_s28 }
  0x82   : > { %329 = vrot.lane.b32.xlu1 %v1772_v13, %s1669_s11  ;;  %404 = vrot.lane.b32.xlu0 %v1795_v24, %s1672_s22 }
  0x86   : > { %353 = vrot.lane.b32.xlu1 %v1795_v24, %s1671_s20  ;;  %379 = vrot.lane.b32.xlu0 %v1802_v28, %s1670_s14 }
  0x88   : > { %v792_v32 = vpop.permute.xlu0 %791 }
  0x89   : > { %v920_v35 = vsel %vm429_vm3, %v1915_v27, %v792_v32 }
  0x8a   : > { %306 = vrot.lane.b32.xlu1 %v1828_v46, %s1668_s28  ;;  %331 = vrot.lane.b32.xlu0 %v1802_v28, %s1669_s11 }
  0x8e   : > { %406 = vrot.lane.b32.xlu1 %v1828_v46, %s1672_s22  ;;  %355 = vrot.lane.b32.xlu0 %v1828_v46, %s1671_s20 }
  0x90   : > { %v794_v33 = vpop.permute.xlu0 %793  ;;  %v819_v34 = vpop.permute.xlu1 %818 }
  0x91   : > { %v929_v36 = vsel %vm439_vm4, %v920_v35, %v819_v34  ;;  %v921_v45 = vsel %vm429_vm3, %v1777_v16, %v794_v33 }
  0x92   : > { %381 = vrot.lane.b32.xlu1 %v1831_v47, %s1670_s14  ;;  %308 = vrot.lane.b32.xlu0 %v1843_v52, %s1668_s28  ;;  %v930_v50 = vsel %vm439_vm4, %v921_v45, %v819_v34 }
  0x94   : > { %v867_v37 = vpop.permute.xlu0 %866  ;;  %v843_v38 = vpop.permute.xlu1 %842 }
  0x95   : > { %v945_v39 = vsel %vm456_vm5, %v929_v36, %v843_v38  ;;  %v946_v51 = vsel %vm456_vm5, %v930_v50, %v843_v38 }
  0x96   : > { %333 = vrot.lane.b32.xlu1 %v1831_v47, %s1669_s11  ;;  %408 = vrot.lane.b32.xlu0 %v1843_v52, %s1672_s22  ;;  %v961_v43 = vsel %vm473_vm6, %v945_v39, %v867_v37 }
  0x98   : > { %v894_v40 = vpop.permute.xlu0 %893  ;;  %v869_v41 = vpop.permute.xlu1 %868 }
  0x99   : > { %v977_v44 = vsel %vm490_vm7, %v961_v43, %v894_v40  ;;  %v962_v53 = vsel %vm473_vm6, %v946_v51, %v869_v41 }
  0x9a   : > { %1535 = vmatprep.mubr.msk.f32.mxu1 %vm510_vm8, %v977_v44  ;;  %357 = vrot.lane.b32.xlu1 %v1843_v52, %s1671_s20 }
  0x9b   : > { %383 = vrot.lane.b32.xlu0 %v1851_v57, %s1670_s14 }
  0x9c   : > { %v821_v48 = vpop.permute.xlu0 %820  ;;  %v796_v49 = vpop.permute.xlu1 %795 }
  0x9d   : > { %v931_v54 = vsel %vm439_vm4, %v921_v45, %v821_v48  ;;  %v922_v60 = vsel %vm429_vm3, %v1795_v24, %v796_v49 }
  0x9e   : > { %310 = vrot.lane.b32.xlu1 %v1864_v4, %s1668_s28  ;;  %v932_v2 = vsel %vm439_vm4, %v922_v60, %v821_v48 }
  0x9f   : > { %335 = vrot.lane.b32.xlu0 %v1851_v57, %s1669_s11 }
  0xa0   : > { %v845_v16 = vpop.permute.xlu0 %844  ;;  %v896_v55 = vpop.permute.xlu1 %895 }
  0xa1   : > { %v947_v56 = vsel %vm456_vm5, %v931_v54, %v845_v16  ;;  %v978_v58 = vsel %vm490_vm7, %v962_v53, %v896_v55  ;;  %v948_v3 = vsel %vm456_vm5, %v932_v2, %v845_v16 }
  0xa2   : > { %v963_v59 = vsel %vm473_vm6, %v947_v56, %v869_v41  ;;  %1536 = vmatmul.mubr.msk.f32.vlgmr.msra.gmra.mxu1 %vm510_vm8, %v978_v58  ;;  %410 = vrot.lane.b32.xlu1 %v1864_v4, %s1672_s22 }
  0xa3   : > { %v979_v61 = vsel %vm490_vm7, %v963_v59, %v896_v55  ;;  %359 = vrot.lane.b32.xlu0 %v1864_v4, %s1671_s20 }
  0xa4   : > { %v798_v62 = vpop.permute.xlu0 %797  ;;  %v871_v63 = vpop.permute.xlu1 %870  ;;  %1538 = vmatprep.mubr.msk.f32.mxu1 %vm510_vm8, %v979_v61 }
  0xa5   : > { %v964_v24 = vsel %vm473_vm6, %v948_v3, %v871_v63  ;;  %v923_v19 = vsel %vm429_vm3, %v1828_v46, %v798_v62 }
  0xa6   : > { %385 = vrot.lane.b32.xlu1 %v1867_v5, %s1670_s14 }
  0xa7   : > { %312 = vrot.lane.b32.xlu0 %v1879_v11, %s1668_s28 }
  0xa8   : > { %v898_v7 = vpop.permute.xlu0 %897  ;;  %v823_v8 = vpop.permute.xlu1 %822 }
  0xa9   : > { %v980_v9 = vsel %vm490_vm7, %v964_v24, %v898_v7  ;;  %v933_v10 = vsel %vm439_vm4, %v922_v60, %v823_v8  ;;  %v934_v21 = vsel %vm439_vm4, %v923_v19, %v823_v8 }
  0xaa   : > { %1539 = vmatmul.mubr.msk.f32.gmra.mxu1 %vm510_vm8, %v980_v9  ;;  %337 = vrot.lane.b32.xlu1 %v1867_v5, %s1669_s11 }
  0xab   : > { %412 = vrot.lane.b32.xlu0 %v1879_v11, %s1672_s22 }
  0xac   : > { %v873_v12 = vpop.permute.xlu0 %872  ;;  %v847_v14 = vpop.permute.xlu1 %846 }
  0xad   : > { %v949_v15 = vsel %vm456_vm5, %v933_v10, %v847_v14  ;;  %v950_v25 = vsel %vm456_vm5, %v934_v21, %v847_v14 }
  0xae   : > { %v965_v17 = vsel %vm473_vm6, %v949_v15, %v871_v63  ;;  %361 = vrot.lane.b32.xlu1 %v1879_v11, %s1671_s20  ;;  %v966_v30 = vsel %vm473_vm6, %v950_v25, %v873_v12 }
  0xaf   : > { %v981_v20 = vsel %vm490_vm7, %v965_v17, %v898_v7  ;;  %387 = vrot.lane.b32.xlu0 %v1887_v18, %s1670_s14 }
  0xb0   : > { %v825_v22 = vpop.permute.xlu0 %824  ;;  %v800_v23 = vpop.permute.xlu1 %799  ;;  %1541 = vmatprep.mubr.msk.f32.mxu1 %vm510_vm8, %v981_v20 }
  0xb1   : > { %v935_v46 = vsel %vm439_vm4, %v923_v19, %v825_v22  ;;  %v924_v35 = vsel %vm429_vm3, %v1843_v52, %v800_v23 }
  0xb2   : > { %314 = vrot.lane.b32.xlu1 %v1899_v26, %s1668_s28  ;;  %v936_v39 = vsel %vm439_vm4, %v924_v35, %v825_v22 }
  0xb3   : > { %339 = vrot.lane.b32.xlu0 %v1887_v18, %s1669_s11 }
  0xb4   : > { %v849_v29 = vpop.permute.xlu0 %848  ;;  %v900_v1 = vpop.permute.xlu1 %899 }
  0xb5   : > { %v951_v32 = vsel %vm456_vm5, %v935_v46, %v849_v29  ;;  %v982_v33 = vsel %vm490_vm7, %v966_v30, %v900_v1  ;;  %v952_v40 = vsel %vm456_vm5, %v936_v39, %v849_v29 }
  0xb6   : > { %v967_v34 = vsel %vm473_vm6, %v951_v32, %v873_v12  ;;  %1542 = vmatmul.mubr.msk.f32.gmra.mxu1 %vm510_vm8, %v982_v33  ;;  %414 = vrot.lane.b32.xlu1 %v1899_v26, %s1672_s22 }
  0xb7   : > { %v983_v36 = vsel %vm490_vm7, %v967_v34, %v900_v1  ;;  %363 = vrot.lane.b32.xlu0 %v1899_v26, %s1671_s20 }
  0xb8   : > { %v802_v37 = vpop.permute.xlu0 %801  ;;  %v875_v38 = vpop.permute.xlu1 %874  ;;  %1544 = vmatprep.mubr.msk.f32.mxu1 %vm510_vm8, %v983_v36 }
  0xb9   : > { %v968_v52 = vsel %vm473_vm6, %v952_v40, %v875_v38  ;;  %v925_v53 = vsel %vm429_vm3, %v1864_v4, %v802_v37 }
  0xba   : > { %389 = vrot.lane.b32.xlu1 %v1807_v31, %s1670_s14 }
  0xbb   : > { %316 = vrot.lane.b32.xlu0 %v1819_v42, %s1668_s28 }
  0xbc   : > { %v902_v41 = vpop.permute.xlu0 %901  ;;  %v827_v43 = vpop.permute.xlu1 %826 }
  0xbd   : > { %v984_v44 = vsel %vm490_vm7, %v968_v52, %v902_v41  ;;  %v937_v45 = vsel %vm439_vm4, %v924_v35, %v827_v43  ;;  %v938_v16 = vsel %vm439_vm4, %v925_v53, %v827_v43 }
  0xbe   : > { %1545 = vmatmul.mubr.msk.f32.gmra.mxu1 %vm510_vm8, %v984_v44  ;;  %341 = vrot.lane.b32.xlu1 %v1807_v31, %s1669_s11 }
  0xbf   : > { %416 = vrot.lane.b32.xlu0 %v1819_v42, %s1672_s22 }
  0xc0   : > { %v877_v48 = vpop.permute.xlu0 %876  ;;  %v851_v49 = vpop.permute.xlu1 %850 }
  0xc1   : > { %v953_v50 = vsel %vm456_vm5, %v937_v45, %v851_v49  ;;  %v954_v58 = vsel %vm456_vm5, %v938_v16, %v851_v49 }
  0xc2   : > { %v969_v51 = vsel %vm473_vm6, %v953_v50, %v875_v38  ;;  %365 = vrot.lane.b32.xlu1 %v1819_v42, %s1671_s20  ;;  %v970_v4 = vsel %vm473_vm6, %v954_v58, %v877_v48  ;;  %s1348_s20 = sshll.u32 %s2283_s13, 4  ;;  %s2362_s20 = int_to_ptr.vmem [resolvable:$true] %s1348_s20 }
  0xc3   : > { %v985_v54 = vsel %vm490_vm7, %v969_v51, %v902_v41  ;;  %391 = vrot.lane.b32.xlu0 %v1667_v0, %s1670_s14  ;;  %s1460_s14 = sshll.u32 %s1721_s19, 11  ;;  %s2369_s19 = scalar_lea.sflag [#allocation3], %s188_s10 }
  0xc4   : > { %v829_v55 = vpop.permute.xlu0 %828  ;;  %v804_v56 = vpop.permute.xlu1 %803  ;;  %1547 = vmatprep.mubr.msk.f32.mxu1 %vm510_vm8, %v985_v54  ;;  %s2358_s27 = scalar_lea.hbm %s2414_s4, %s1460_s14  ;;  %s1605_s29 = scalar_lea.vmem %s2362_s20, 2048 }
  0xc5   : > { %v939_v59 = vsel %vm439_vm4, %v925_v53, %v829_v55  ;;  %v926_v2 = vsel %vm429_vm3, %v1879_v11, %v804_v56  ;;  %p1606_p11 = scmp.ne.s32.totalorder %s2362_s20, %s1605_s29  ;;  %p1612_p0 = scmp.lt.s32.totalorder %s2362_s20, %s1610_s5 }
  0xc6   : > { %418 = vrot.lane.b32.xlu1 %v1915_v27, %s1672_s22  ;;  %v940_v7 = vsel %vm439_vm4, %v926_v2, %v829_v55  ;;  %p1613_p1 = scmp.lt.s32.totalorder %s1611_s6, %s1605_s29 }
  0xc7   : > { %p1607_p12 = pnand %p1606_p11, %p1738_p5 }
  0xc8   : > { %v853_v60 = vpop.permute.xlu0 %852  ;;  %v904_v61 = vpop.permute.xlu1 %903  ;;  %p1614_p2 = por %p1613_p1, %p1612_p0 }
  0xc9   : > { %v955_v62 = vsel %vm456_vm5, %v939_v59, %v853_v60  ;;  %v986_v0 = vsel %vm490_vm7, %v970_v4, %v904_v61  ;;  %v956_v8 = vsel %vm456_vm5, %v940_v7, %v853_v60  ;;  %p1608_p13 = pneg %p1607_p12 }
  0xca   : > { %v971_v63 = vsel %vm473_vm6, %v955_v62, %v877_v48  ;;  %1548 = vmatmul.mubr.msk.f32.gmra.mxu1 %vm510_vm8, %v986_v0 }
  0xcb   : > { %v987_v3 = vsel %vm490_vm7, %v971_v63, %v904_v61  ;;  %p1615_p3 = pnand %p1614_p2, %p1608_p13 }
  0xcc   : > { %v806_v27 = vpop.permute.xlu0 %805  ;;  %v879_v24 = vpop.permute.xlu1 %878  ;;  %1550 = vmatprep.mubr.msk.f32.mxu1 %vm510_vm8, %v987_v3 }
  0xcd   : > { %v972_v9 = vsel %vm473_vm6, %v956_v8, %v879_v24  ;;  %v927_v21 = vsel %vm429_vm3, %v1899_v26, %v806_v27 }
  0xd0   : > { %v906_v10 = vpop.permute.xlu0 %905  ;;  %v831_v12 = vpop.permute.xlu1 %830 }
  0xd1   : > { %v988_v14 = vsel %vm490_vm7, %v972_v9, %v906_v10  ;;  %v941_v11 = vsel %vm439_vm4, %v926_v2, %v831_v12  ;;  %v942_v23 = vsel %vm439_vm4, %v927_v21, %v831_v12 }
  0xd2   : > { %1551 = vmatmul.mubr.msk.f32.gmra.mxu1 %vm510_vm8, %v988_v14 }
  0xd4   : > { %v881_v15 = vpop.permute.xlu0 %880  ;;  %v855_v17 = vpop.permute.xlu1 %854 }
  0xd5   : > { %v957_v19 = vsel %vm456_vm5, %v941_v11, %v855_v17  ;;  %v958_v29 = vsel %vm456_vm5, %v942_v23, %v855_v17 }
  0xd6   : > { %v973_v20 = vsel %vm473_vm6, %v957_v19, %v879_v24  ;;  %v974_v33 = vsel %vm473_vm6, %v958_v29, %v881_v15 }
  0xd7   : > { %v989_v22 = vsel %vm490_vm7, %v973_v20, %v906_v10 }
  0xd8   : > { %v833_v25 = vpop.permute.xlu0 %832  ;;  %v808_v46 = vpop.permute.xlu1 %807  ;;  %1553 = vmatprep.mubr.msk.f32.mxu1 %vm510_vm8, %v989_v22 }
  0xd9   : > { %v943_v30 = vsel %vm439_vm4, %v927_v21, %v833_v25  ;;  %v928_v1 = vsel %vm429_vm3, %v1819_v42, %v808_v46 }
  0xda   : > { %v944_v37 = vsel %vm439_vm4, %v928_v1, %v833_v25 }
  0xdc   : > { %v857_v32 = vpop.permute.xlu0 %856  ;;  %v908_v34 = vpop.permute.xlu1 %907 }
  0xdd   : > { %v959_v26 = vsel %vm456_vm5, %v943_v30, %v857_v32  ;;  %v990_v35 = vsel %vm490_vm7, %v974_v33, %v908_v34  ;;  %v960_v39 = vsel %vm456_vm5, %v944_v37, %v857_v32 }
  0xde   : > { %v975_v36 = vsel %vm473_vm6, %v959_v26, %v881_v15  ;;  %1554 = vmatmul.mubr.msk.f32.gmra.mxu1 %vm510_vm8, %v990_v35 }
  0xdf   : > { %v991_v38 = vsel %vm490_vm7, %v975_v36, %v908_v34 }
  0xe0   : > { %v883_v40 = vpop.permute.xlu1 %882  ;;  %1556 = vmatprep.mubr.msk.f32.mxu1 %vm510_vm8, %v991_v38  ;;  %v910_v42 = vpop.permute.xlu0 %909 }
  0xe1   : > { %v976_v52 = vsel %vm473_vm6, %v960_v39, %v883_v40 }
  0xe2   : > { %v992_v41 = vsel %vm490_vm7, %v976_v52, %v910_v42 }
  0xe3   : > { %1557 = vmatmul.mubr.msk.f32.gmra.mxu1 %vm510_vm8, %v992_v41 }
  0xe4   : > { %v301_v43 = vpop.permute.xlu1 %300  ;;  %v303_v44 = vpop.permute.xlu0 %302 }
  0xe5   : > { %v430_v45 = vsel %vm429_vm3, 0.0, %v301_v43  ;;  %v431_v50 = vsel %vm429_vm3, %v1763_v6, %v303_v44 }
  0xe8   : > { %v328_v48 = vpop.permute.xlu1 %327  ;;  %v352_v49 = vpop.permute.xlu0 %351 }
  0xe9   : > { %v440_v51 = vsel %vm439_vm4, %v430_v45, %v328_v48  ;;  %v441_v54 = vsel %vm439_vm4, %v431_v50, %v328_v48 }
  0xea   : > { %v457_v53 = vsel %vm456_vm5, %v440_v51, %v352_v49  ;;  %v458_v58 = vsel %vm456_vm5, %v441_v54, %v352_v49 }
  0xec   : > { %v376_v16 = vpop.permute.xlu1 %375  ;;  %v378_v55 = vpop.permute.xlu0 %377 }
  0xed   : > { %v474_v56 = vsel %vm473_vm6, %v457_v53, %v376_v16  ;;  %v475_v61 = vsel %vm473_vm6, %v458_v58, %v378_v55 }
  0xf0   : > { %v403_v59 = vpop.permute.xlu1 %402  ;;  %v305_v60 = vpop.permute.xlu0 %304 }
  0xf1   : > { %v491_v4 = vsel %vm490_vm7, %v474_v56, %v403_v59  ;;  %v432_v0 = vsel %vm429_vm3, %v1772_v13, %v305_v60 }
  0xf2   : > { %1505 = vmatprep.mubr.msk.f32.mxu0 %vm510_vm8, %v491_v4 }
  0xf4   : > { %v330_v6 = vpop.permute.xlu1 %329  ;;  %v405_v62 = vpop.permute.xlu0 %404 }
  0xf5   : > { %v492_v63 = vsel %vm490_vm7, %v475_v61, %v405_v62  ;;  %v442_v2 = vsel %vm439_vm4, %v431_v50, %v330_v6  ;;  %v443_v3 = vsel %vm439_vm4, %v432_v0, %v330_v6 }
  0xf6   : > { %1506 = vmatmul.mubr.msk.f32.vlgmr.msra.gmra.mxu0 %vm510_vm8, %v492_v63 }
  0xf8   : > { %v354_v27 = vpop.permute.xlu1 %353  ;;  %v380_v24 = vpop.permute.xlu0 %379 }
  0xf9   : > { %v459_v7 = vsel %vm456_vm5, %v442_v2, %v354_v27  ;;  %v460_v9 = vsel %vm456_vm5, %v443_v3, %v354_v27 }
  0xfa   : > { %v476_v8 = vsel %vm473_vm6, %v459_v7, %v378_v55  ;;  %v477_v11 = vsel %vm473_vm6, %v460_v9, %v380_v24 }
  0xfb   : > { %v493_v10 = vsel %vm490_vm7, %v476_v8, %v405_v62 }
  0xfc   : > { %1508 = vmatprep.mubr.msk.f32.mxu0 %vm510_vm8, %v493_v10  ;;  %v307_v13 = vpop.permute.xlu1 %306  ;;  %v332_v12 = vpop.permute.xlu0 %331 }
  0xfd   : > { %v433_v14 = vsel %vm429_vm3, %v1802_v28, %v307_v13  ;;  %v444_v15 = vsel %vm439_vm4, %v432_v0, %v332_v12 }
  0xfe   : > { %v445_v17 = vsel %vm439_vm4, %v433_v14, %v332_v12 }
 0x100   : > { %v407_v19 = vpop.permute.xlu1 %406  ;;  %v356_v20 = vpop.permute.xlu0 %355 }
 0x101   : > { %v494_v21 = vsel %vm490_vm7, %v477_v11, %v407_v19  ;;  %v461_v22 = vsel %vm456_vm5, %v444_v15, %v356_v20  ;;  %v462_v25 = vsel %vm456_vm5, %v445_v17, %v356_v20 }
 0x102   : > { %v478_v23 = vsel %vm473_vm6, %v461_v22, %v380_v24  ;;  %1509 = vmatmul.mubr.msk.f32.gmra.mxu0 %vm510_vm8, %v494_v21 }
 0x103   : > { %v495_v28 = vsel %vm490_vm7, %v478_v23, %v407_v19 }
 0x104   : > { %v382_v46 = vpop.permute.xlu1 %381  ;;  %v309_v29 = vpop.permute.xlu0 %308  ;;  %1511 = vmatprep.mubr.msk.f32.mxu0 %vm510_vm8, %v495_v28 }
 0x105   : > { %v479_v30 = vsel %vm473_vm6, %v462_v25, %v382_v46  ;;  %v434_v33 = vsel %vm429_vm3, %v1831_v47, %v309_v29 }
 0x108   : > { %v334_v1 = vpop.permute.xlu1 %333  ;;  %v409_v32 = vpop.permute.xlu0 %408 }
 0x109   : > { %v496_v34 = vsel %vm490_vm7, %v479_v30, %v409_v32  ;;  %v446_v26 = vsel %vm439_vm4, %v433_v14, %v334_v1  ;;  %v447_v35 = vsel %vm439_vm4, %v434_v33, %v334_v1 }
 0x10a   : > { %1512 = vmatmul.mubr.msk.f32.gmra.mxu0 %vm510_vm8, %v496_v34 }
 0x10c   : > { %v358_v36 = vpop.permute.xlu1 %357 }
 0x10d   : > { %v463_v37 = vsel %vm456_vm5, %v446_v26, %v358_v36  ;;  %v384_v38 = vpop.permute.xlu0 %383  ;;  %v464_v40 = vsel %vm456_vm5, %v447_v35, %v358_v36 }
 0x10e   : > { %v480_v39 = vsel %vm473_vm6, %v463_v37, %v382_v46  ;;  %v481_v41 = vsel %vm473_vm6, %v464_v40, %v384_v38  ;;  %v2218_v37 = vld [vmem:[%s2412_s2] ss:$0 sm:$0xff] }
 0x10f   : > { %v497_v42 = vsel %vm490_vm7, %v480_v39, %v409_v32 }
 0x110   : > { %1514 = vmatprep.mubr.msk.f32.mxu0 %vm510_vm8, %v497_v42  ;;  %v311_v47 = vpop.permute.xlu1 %310 }
 0x111   : > { %v336_v52 = vpop.permute.xlu0 %335  ;;  %v435_v43 = vsel %vm429_vm3, %v1851_v57, %v311_v47 }
 0x112   : > { %v448_v44 = vsel %vm439_vm4, %v434_v33, %v336_v52  ;;  %v449_v48 = vsel %vm439_vm4, %v435_v43, %v336_v52 }
 0x114   : > { %v411_v45 = vpop.permute.xlu1 %410 }
 0x115   : > { %v498_v49 = vsel %vm490_vm7, %v481_v41, %v411_v45  ;;  %v360_v50 = vpop.permute.xlu0 %359 }
 0x116   : > { %v465_v51 = vsel %vm456_vm5, %v448_v44, %v360_v50  ;;  %1515 = vmatmul.mubr.msk.f32.gmra.mxu0 %vm510_vm8, %v498_v49  ;;  %v466_v54 = vsel %vm456_vm5, %v449_v48, %v360_v50 }
 0x117   : > { %v482_v53 = vsel %vm473_vm6, %v465_v51, %v384_v38  ;;  %v2223_v38 = vld [vmem:[%s2413_s3] ss:$0 sm:$0xff] }
 0x118   : > { %v386_v16 = vpop.permute.xlu1 %385  ;;  %v499_v55 = vsel %vm490_vm7, %v482_v53, %v411_v45 }
 0x119   : > { %v313_v57 = vpop.permute.xlu0 %312  ;;  %1517 = vmatprep.mubr.msk.f32.mxu0 %vm510_vm8, %v499_v55  ;;  %v483_v56 = vsel %vm473_vm6, %v466_v54, %v386_v16 }
 0x11a   : > { %v436_v59 = vsel %vm429_vm3, %v1867_v5, %v313_v57 }
 0x11c   : > { %v338_v58 = vpop.permute.xlu1 %337 }
 0x11d   : > { %v413_v60 = vpop.permute.xlu0 %412  ;;  %v450_v4 = vsel %vm439_vm4, %v435_v43, %v338_v58  ;;  %v451_v6 = vsel %vm439_vm4, %v436_v59, %v338_v58 }
 0x11e   : > { %v500_v61 = vsel %vm490_vm7, %v483_v56, %v413_v60 }
 0x11f   : > { %1518 = vmatmul.mubr.msk.f32.gmra.mxu0 %vm510_vm8, %v500_v61 }
 0x120   : > { %v362_v62 = vpop.permute.xlu1 %361 }
 0x121   : > { %v467_v0 = vsel %vm456_vm5, %v450_v4, %v362_v62  ;;  %v388_v63 = vpop.permute.xlu0 %387  ;;  %v468_v3 = vsel %vm456_vm5, %v451_v6, %v362_v62 }
 0x122   : > { %v484_v2 = vsel %vm473_vm6, %v467_v0, %v386_v16  ;;  %v485_v7 = vsel %vm473_vm6, %v468_v3, %v388_v63 }
 0x123   : > { %v501_v27 = vsel %vm490_vm7, %v484_v2, %v413_v60 }
 0x124   : > { %1520 = vmatprep.mubr.msk.f32.mxu0 %vm510_vm8, %v501_v27  ;;  %v315_v5 = vpop.permute.xlu1 %314 }
 0x125   : > { %v340_v24 = vpop.permute.xlu0 %339  ;;  %v437_v8 = vsel %vm429_vm3, %v1887_v18, %v315_v5 }
 0x126   : > { %v452_v9 = vsel %vm439_vm4, %v436_v59, %v340_v24  ;;  %v453_v13 = vsel %vm439_vm4, %v437_v8, %v340_v24 }
 0x128   : > { %v415_v10 = vpop.permute.xlu1 %414 }
 0x129   : > { %v502_v12 = vsel %vm490_vm7, %v485_v7, %v415_v10  ;;  %v364_v14 = vpop.permute.xlu0 %363 }
 0x12a   : > { %v469_v11 = vsel %vm456_vm5, %v452_v9, %v364_v14  ;;  %1521 = vmatmul.mubr.msk.f32.gmra.mxu0 %vm510_vm8, %v502_v12  ;;  %v470_v17 = vsel %vm456_vm5, %v453_v13, %v364_v14 }
 0x12b   : > { %v486_v15 = vsel %vm473_vm6, %v469_v11, %v388_v63 }
 0x12c   : > { %v390_v19 = vpop.permute.xlu1 %389  ;;  %v503_v20 = vsel %vm490_vm7, %v486_v15, %v415_v10 }
 0x12d   : > { %1523 = vmatprep.mubr.msk.f32.mxu0 %vm510_vm8, %v503_v20  ;;  %v317_v18 = vpop.permute.xlu0 %316  ;;  %v487_v21 = vsel %vm473_vm6, %v470_v17, %v390_v19 }
 0x12e   : > { %v438_v22 = vsel %vm429_vm3, %v1807_v31, %v317_v18 }
 0x130   : > { %v342_v23 = vpop.permute.xlu1 %341 }
 0x131   : > { %v417_v25 = vpop.permute.xlu0 %416  ;;  %v454_v28 = vsel %vm439_vm4, %v437_v8, %v342_v23  ;;  %v455_v46 = vsel %vm439_vm4, %v438_v22, %v342_v23 }
 0x132   : > { %v504_v29 = vsel %vm490_vm7, %v487_v21, %v417_v25 }
 0x133   : > { %1524 = vmatmul.mubr.msk.f32.gmra.mxu0 %vm510_vm8, %v504_v29 }
 0x134   : > { %v366_v30 = vpop.permute.xlu1 %365 }
 0x135   : > { %v471_v1 = vsel %vm456_vm5, %v454_v28, %v366_v30  ;;  %v472_v32 = vsel %vm456_vm5, %v455_v46, %v366_v30  ;;  %v392_v33 = vpop.permute.xlu0 %391 }
 0x136   : > { %v488_v34 = vsel %vm473_vm6, %v471_v1, %v390_v19  ;;  %v489_v31 = vsel %vm473_vm6, %v472_v32, %v392_v33 }
 0x137   : > { %v505_v26 = vsel %vm490_vm7, %v488_v34, %v417_v25 }
 0x138   : > { %1526 = vmatprep.mubr.msk.f32.mxu0 %vm510_vm8, %v505_v26  ;;  %v419_v35 = vpop.permute.xlu1 %418 }
 0x139   : > { %v506_v36 = vsel %vm490_vm7, %v489_v31, %v419_v35 }
 0x13a   : > { %1527 = vmatmul.mubr.msk.f32.gmra.mxu0 %vm510_vm8, %v506_v36 }
 0x162   : > { %v1537_v39 = vpop.f32.mrf.mxu1 }
 0x163   : > { %v1191_v40 = vmul.f32 %v1537_v39, %v2218_v37 }
 0x164   : > { %v1111_v42 = vpop.f32.mrf.mxu1 }
 0x165   : > { %v1207_v47 = vadd.f32 %v2223_v38, %v1191_v40  ;;  %v1190_v52 = vmul.f32 %v2218_v37, %v1111_v42 }
 0x167   : > { %v1223_v41 = vmax.f32 %v1207_v47, 0.0  ;;  %v1206_v43 = vadd.f32 %v2223_v38, %v1190_v52 }
 0x169   : > { %v1222_v44 = vmax.f32 %v1206_v43, 0.0  ;;  %1256 = vrot.lane.b32.xlu1 %v1223_v41, %s1669_s11 }
 0x16a   : > { %v1540_v45 = vpop.f32.mrf.mxu1 }
 0x16b   : > { %v1193_v48 = vmul.f32 %v1540_v45, %v2218_v37  ;;  %1254 = vrot.lane.b32.xlu0 %v1222_v44, %s1669_s11 }
 0x16c   : > { %v1121_v49 = vpop.f32.mrf.mxu1 }
 0x16d   : > { %v1209_v50 = vadd.f32 %v2223_v38, %v1193_v48  ;;  %v1192_v51 = vmul.f32 %v2218_v37, %v1121_v49 }
 0x16f   : > { %v1225_v53 = vmax.f32 %v1209_v50, 0.0  ;;  %v1208_v54 = vadd.f32 %v2223_v38, %v1192_v51 }
 0x171   : > { %v1224_v16 = vmax.f32 %v1208_v54, 0.0  ;;  %1260 = vrot.lane.b32.xlu1 %v1225_v53, %s1669_s11 }
 0x173   : > { %1258 = vrot.lane.b32.xlu0 %v1224_v16, %s1669_s11 }
 0x176   : > { %v1543_v55 = vpop.f32.mrf.mxu1 }
 0x177   : > { %v1195_v57 = vmul.f32 %v1543_v55, %v2218_v37 }
 0x178   : > { %v1131_v56 = vpop.f32.mrf.mxu1 }
 0x179   : > { %v1211_v58 = vadd.f32 %v2223_v38, %v1195_v57  ;;  %v1194_v59 = vmul.f32 %v2218_v37, %v1131_v56 }
 0x17b   : > { %v1227_v60 = vmax.f32 %v1211_v58, 0.0  ;;  %v1210_v4 = vadd.f32 %v2223_v38, %v1194_v59 }
 0x17d   : > { %v1226_v61 = vmax.f32 %v1210_v4, 0.0  ;;  %1264 = vrot.lane.b32.xlu1 %v1227_v60, %s1669_s11 }
 0x17e   : > { %v1546_v6 = vpop.f32.mrf.mxu1 }
 0x17f   : > { %v1197_v62 = vmul.f32 %v1546_v6, %v2218_v37  ;;  %1262 = vrot.lane.b32.xlu0 %v1226_v61, %s1669_s11 }
 0x180   : > { %v1141_v0 = vpop.f32.mrf.mxu1 }
 0x181   : > { %v1213_v63 = vadd.f32 %v2223_v38, %v1197_v62  ;;  %v1196_v2 = vmul.f32 %v2218_v37, %v1141_v0 }
 0x183   : > { %v1229_v3 = vmax.f32 %v1213_v63, 0.0  ;;  %v1212_v27 = vadd.f32 %v2223_v38, %v1196_v2 }
 0x185   : > { %v1228_v5 = vmax.f32 %v1212_v27, 0.0  ;;  %1268 = vrot.lane.b32.xlu1 %v1229_v3, %s1669_s11 }
 0x187   : > { %1266 = vrot.lane.b32.xlu0 %v1228_v5, %s1669_s11 }
 0x18a   : > { %v1549_v24 = vpop.f32.mrf.mxu1 }
 0x18b   : > { %v1199_v7 = vmul.f32 %v1549_v24, %v2218_v37 }
 0x18c   : > { %v1151_v8 = vpop.f32.mrf.mxu1 }
 0x18d   : > { %v1215_v9 = vadd.f32 %v2223_v38, %v1199_v7  ;;  %v1198_v10 = vmul.f32 %v2218_v37, %v1151_v8 }
 0x18f   : > { %v1231_v13 = vmax.f32 %v1215_v9, 0.0  ;;  %v1214_v12 = vadd.f32 %v2223_v38, %v1198_v10 }
 0x191   : > { %v1230_v14 = vmax.f32 %v1214_v12, 0.0  ;;  %1272 = vrot.lane.b32.xlu1 %v1231_v13, %s1669_s11 }
 0x192   : > { %v1552_v11 = vpop.f32.mrf.mxu1 }
 0x193   : > { %v1201_v15 = vmul.f32 %v1552_v11, %v2218_v37  ;;  %1270 = vrot.lane.b32.xlu0 %v1230_v14, %s1669_s11 }
 0x194   : > { %v1161_v17 = vpop.f32.mrf.mxu1 }
 0x195   : > { %v1217_v19 = vadd.f32 %v2223_v38, %v1201_v15  ;;  %v1200_v20 = vmul.f32 %v2218_v37, %v1161_v17 }
 0x197   : > { %v1233_v18 = vmax.f32 %v1217_v19, 0.0  ;;  %v1216_v21 = vadd.f32 %v2223_v38, %v1200_v20 }
 0x199   : > { %v1232_v22 = vmax.f32 %v1216_v21, 0.0  ;;  %1276 = vrot.lane.b32.xlu1 %v1233_v18, %s1669_s11 }
 0x19b   : > { %1274 = vrot.lane.b32.xlu0 %v1232_v22, %s1669_s11 }
 0x19e   : > { %v1555_v23 = vpop.f32.mrf.mxu1 }
 0x19f   : > { %v1203_v25 = vmul.f32 %v1555_v23, %v2218_v37 }
 0x1a0   : > { %v1171_v28 = vpop.f32.mrf.mxu1 }
 0x1a1   : > { %v1219_v46 = vadd.f32 %v2223_v38, %v1203_v25  ;;  %v1202_v29 = vmul.f32 %v2218_v37, %v1171_v28 }
 0x1a3   : > { %v1235_v30 = vmax.f32 %v1219_v46, 0.0  ;;  %v1218_v1 = vadd.f32 %v2223_v38, %v1202_v29  ;;  %v1558_v32 = vpop.f32.mrf.mxu1 }
 0x1a4   : > { %v1205_v33 = vmul.f32 %v1558_v32, %v2218_v37 }
 0x1a5   : > { %v1234_v34 = vmax.f32 %v1218_v1, 0.0  ;;  %1280 = vrot.lane.b32.xlu1 %v1235_v30, %s1669_s11  ;;  %v1181_v31 = vpop.f32.mrf.mxu1 }
 0x1a6   : > { %v1221_v26 = vadd.f32 %v2223_v38, %v1205_v33  ;;  %v1204_v35 = vmul.f32 %v2218_v37, %v1181_v31 }
 0x1a7   : > { %1278 = vrot.lane.b32.xlu0 %v1234_v34, %s1669_s11 }
 0x1a8   : > { %v1237_v36 = vmax.f32 %v1221_v26, 0.0  ;;  %v1220_v39 = vadd.f32 %v2223_v38, %v1204_v35 }
 0x1aa   : > { %v1236_v40 = vmax.f32 %v1220_v39, 0.0  ;;  %1284 = vrot.lane.b32.xlu1 %v1237_v36, %s1669_s11 }
 0x1ac   : > { %1282 = vrot.lane.b32.xlu0 %v1236_v40, %s1669_s11 }
 0x1b6   : > { %v1507_v42 = vpop.f32.mrf.mxu0 }
 0x1b7   : > { %v711_v52 = vmul.f32 %v1507_v42, %v2218_v37 }
 0x1b8   : > { %v625_v47 = vpop.f32.mrf.mxu0 }
 0x1b9   : > { %v710_v41 = vmul.f32 %v2218_v37, %v625_v47  ;;  %v733_v44 = vadd.f32 %v2223_v38, %v711_v52 }
 0x1bb   : > { %v732_v45 = vadd.f32 %v2223_v38, %v710_v41  ;;  %v749_v49 = vmax.f32 %v733_v44, 0.0 }
 0x1bd   : > { %v748_v53 = vmax.f32 %v732_v45, 0.0 }
 0x1c2   : > { %v1510_v43 = vpop.f32.mrf.mxu0 }
 0x1c3   : > { %v713_v50 = vmul.f32 %v1510_v43, %v2218_v37 }
 0x1c4   : > { %v635_v48 = vpop.f32.mrf.mxu0 }
 0x1c5   : > { %v712_v54 = vmul.f32 %v2218_v37, %v635_v48  ;;  %v735_v57 = vadd.f32 %v2223_v38, %v713_v50 }
 0x1c7   : > { %v734_v58 = vadd.f32 %v2223_v38, %v712_v54  ;;  %v751_v60 = vmax.f32 %v735_v57, 0.0 }
 0x1c9   : > { %v750_v61 = vmax.f32 %v734_v58, 0.0 }
 0x1ca   : > { %v1513_v59 = vpop.f32.mrf.mxu0 }
 0x1cb   : > { %v715_v63 = vmul.f32 %v1513_v59, %v2218_v37 }
 0x1cc   : > { %v645_v62 = vpop.f32.mrf.mxu0 }
 0x1cd   : > { %v714_v3 = vmul.f32 %v2218_v37, %v645_v62  ;;  %v737_v5 = vadd.f32 %v2223_v38, %v715_v63 }
 0x1cf   : > { %v736_v24 = vadd.f32 %v2223_v38, %v714_v3  ;;  %v753_v8 = vmax.f32 %v737_v5, 0.0 }
 0x1d1   : > { %v752_v13 = vmax.f32 %v736_v24, 0.0 }
 0x1d6   : > { %v1516_v27 = vpop.f32.mrf.mxu0 }
 0x1d7   : > { %v717_v9 = vmul.f32 %v1516_v27, %v2218_v37 }
 0x1d8   : > { %v655_v7 = vpop.f32.mrf.mxu0 }
 0x1d9   : > { %v716_v12 = vmul.f32 %v2218_v37, %v655_v7  ;;  %v739_v15 = vadd.f32 %v2223_v38, %v717_v9 }
 0x1db   : > { %v1257_v51 = vpop.permute.xlu1 %1256  ;;  %v738_v19 = vadd.f32 %v2223_v38, %v716_v12  ;;  %v755_v18 = vmax.f32 %v739_v15, 0.0 }
 0x1dc   : > { %v1303_v16 = vsel %vm439_vm4, %v749_v49, %v1257_v51 }
 0x1dd   : > { %1319 = vst.msk [vmem:[%s2283_s13 + $0x8] sm:$0xff] %vm473_vm6, %v1303_v16  ;;  %v1255_v55 = vpop.permute.xlu0 %1254  ;;  %v754_v22 = vmax.f32 %v738_v19, 0.0 }
 0x1de   : > { %v1302_v56 = vsel %vm439_vm4, %v748_v53, %v1255_v55 }
 0x1df   : > { %1318 = vst.msk [vmem:[%s2283_s13] sm:$0xff] %vm473_vm6, %v1302_v56  ;;  %v1519_v20 = vpop.f32.mrf.mxu0 }
 0x1e0   : > { %v719_v46 = vmul.f32 %v1519_v20, %v2218_v37 }
 0x1e1   : > { %v665_v25 = vpop.f32.mrf.mxu0 }
 0x1e2   : > { %v718_v30 = vmul.f32 %v2218_v37, %v665_v25  ;;  %v741_v32 = vadd.f32 %v2223_v38, %v719_v46 }
 0x1e3   : > { %v1261_v4 = vpop.permute.xlu1 %1260 }
 0x1e4   : > { %v1305_v6 = vsel %vm439_vm4, %v751_v60, %v1261_v4  ;;  %v740_v33 = vadd.f32 %v2223_v38, %v718_v30  ;;  %v757_v31 = vmax.f32 %v741_v32, 0.0 }
 0x1e5   : > { %1321 = vst.msk [vmem:[%s2283_s13 + $0x18] sm:$0xff] %vm473_vm6, %v1305_v6  ;;  %v1259_v0 = vpop.permute.xlu0 %1258 }
 0x1e6   : > { %v1304_v2 = vsel %vm439_vm4, %v750_v61, %v1259_v0  ;;  %v756_v36 = vmax.f32 %v740_v33, 0.0 }
 0x1e7   : > { %1320 = vst.msk [vmem:[%s2283_s13 + $0x10] sm:$0xff] %vm473_vm6, %v1304_v2 }
 0x1ea   : > { %v1522_v1 = vpop.f32.mrf.mxu0 }
 0x1eb   : > { %v721_v26 = vmul.f32 %v1522_v1, %v2218_v37 }
 0x1ec   : > { %v675_v34 = vpop.f32.mrf.mxu0 }
 0x1ed   : > { %v720_v39 = vmul.f32 %v2218_v37, %v675_v34  ;;  %v743_v47 = vadd.f32 %v2223_v38, %v721_v26 }
 0x1ef   : > { %v1265_v10 = vpop.permute.xlu1 %1264  ;;  %v742_v41 = vadd.f32 %v2223_v38, %v720_v39  ;;  %v759_v44 = vmax.f32 %v743_v47, 0.0 }
 0x1f0   : > { %v1307_v14 = vsel %vm439_vm4, %v753_v8, %v1265_v10 }
 0x1f1   : > { %1323 = vst.msk [vmem:[%s2283_s13 + $0x28] sm:$0xff] %vm473_vm6, %v1307_v14  ;;  %v1263_v11 = vpop.permute.xlu0 %1262  ;;  %v758_v48 = vmax.f32 %v742_v41, 0.0 }
 0x1f2   : > { %v1306_v17 = vsel %vm439_vm4, %v752_v13, %v1263_v11 }
 0x1f3   : > { %1322 = vst.msk [vmem:[%s2283_s13 + $0x20] sm:$0xff] %vm473_vm6, %v1306_v17  ;;  %v1525_v43 = vpop.f32.mrf.mxu0 }
 0x1f4   : > { %v723_v53 = vmul.f32 %v1525_v43, %v2218_v37 }
 0x1f5   : > { %v685_v49 = vpop.f32.mrf.mxu0 }
 0x1f6   : > { %v722_v55 = vmul.f32 %v2218_v37, %v685_v49  ;;  %v745_v57 = vadd.f32 %v2223_v38, %v723_v53 }
 0x1f7   : > { %v1269_v21 = vpop.permute.xlu1 %1268 }
 0x1f8   : > { %v1309_v23 = vsel %vm439_vm4, %v755_v18, %v1269_v21  ;;  %v744_v59 = vadd.f32 %v2223_v38, %v722_v55  ;;  %v761_v4 = vmax.f32 %v745_v57, 0.0 }
 0x1f9   : > { %1325 = vst.msk [vmem:[%s2283_s13 + $0x38] sm:$0xff] %vm473_vm6, %v1309_v23  ;;  %v1267_v28 = vpop.permute.xlu0 %1266 }
 0x1fa   : > { %v1308_v29 = vsel %vm439_vm4, %v754_v22, %v1267_v28  ;;  %v1528_v16 = vpop.f32.mrf.mxu0  ;;  %v760_v62 = vmax.f32 %v744_v59, 0.0 }
 0x1fb   : > { %1324 = vst.msk [vmem:[%s2283_s13 + $0x30] sm:$0xff] %vm473_vm6, %v1308_v29  ;;  %v725_v58 = vmul.f32 %v1528_v16, %v2218_v37 }
 0x1fc   : > { %v695_v56 = vpop.f32.mrf.mxu0 }
 0x1fd   : > { %v724_v60 = vmul.f32 %v2218_v37, %v695_v56  ;;  %v747_v61 = vadd.f32 %v2223_v38, %v725_v58 }
 0x1ff   : > { %v746_v63 = vadd.f32 %v2223_v38, %v724_v60  ;;  %v763_v37 = vmax.f32 %v747_v61, 0.0 }
 0x201   : > { %v762_v5 = vmax.f32 %v746_v63, 0.0 }
 0x203   : > { %v1273_v35 = vpop.permute.xlu1 %1272 }
 0x204   : > { %v1311_v40 = vsel %vm439_vm4, %v757_v31, %v1273_v35 }
 0x205   : > { %1327 = vst.msk [vmem:[%s2283_s13 + $0x48] sm:$0xff] %vm473_vm6, %v1311_v40  ;;  %v1271_v42 = vpop.permute.xlu0 %1270 }
 0x206   : > { %v1310_v52 = vsel %vm439_vm4, %v756_v36, %v1271_v42 }
 0x207   : > { %1326 = vst.msk [vmem:[%s2283_s13 + $0x40] sm:$0xff] %vm473_vm6, %v1310_v52 }
 0x20b   : > { %v1277_v45 = vpop.permute.xlu1 %1276 }
 0x20c   : > { %v1313_v50 = vsel %vm439_vm4, %v759_v44, %v1277_v45 }
 0x20d   : > { %1329 = vst.msk [vmem:[%s2283_s13 + $0x58] sm:$0xff] %vm473_vm6, %v1313_v50  ;;  %v1275_v51 = vpop.permute.xlu0 %1274 }
 0x20e   : > { %v1312_v54 = vsel %vm439_vm4, %v758_v48, %v1275_v51 }
 0x20f   : > { %1328 = vst.msk [vmem:[%s2283_s13 + $0x50] sm:$0xff] %vm473_vm6, %v1312_v54 }
 0x217   : > { %v1281_v6 = vpop.permute.xlu1 %1280 }
 0x218   : > { %v1315_v0 = vsel %vm439_vm4, %v761_v4, %v1281_v6 }
 0x219   : > { %1331 = vst.msk [vmem:[%s2283_s13 + $0x68] sm:$0xff] %vm473_vm6, %v1315_v0  ;;  %v1279_v2 = vpop.permute.xlu0 %1278 }
 0x21a   : > { %v1314_v3 = vsel %vm439_vm4, %v760_v62, %v1279_v2 }
 0x21b   : > { %1330 = vst.msk [vmem:[%s2283_s13 + $0x60] sm:$0xff] %vm473_vm6, %v1314_v3 }
 0x21c   : > { %v1285_v27 = vpop.permute.xlu1 %1284 }
 0x21d   : > { %v1317_v24 = vsel %vm439_vm4, %v763_v37, %v1285_v27 }
 0x21e   : > { %1333 = vst.msk [vmem:[%s2283_s13 + $0x78] sm:$0xff] %vm473_vm6, %v1317_v24  ;;  %v1283_v38 = vpop.permute.xlu0 %1282 }
 0x21f   : > { %v1316_v7 = vsel %vm439_vm4, %v762_v5, %v1283_v38 }
 0x220   : > { %1332 = vst.msk [vmem:[%s2283_s13 + $0x70] sm:$0xff] %vm473_vm6, %v1316_v7 }
 0x221   : > { %1618 = shalt.err (!%p1615_p3)
}
 0x222   : > { %s1619_s28 = scalar_lea.hbm %s2358_s27, 2048  ;;  %s1623_s9 = scalar_lea.hbm %s2414_s4, 4096 }
 0x223   : > { %p1620_p4 = scmp.ne.s32.totalorder %s2358_s27, %s1619_s28  ;;  %p1624_p9 = scmp.lt.s32.totalorder %s2358_s27, %s2414_s4 }
 0x224   : > { %p1625_p10 = scmp.lt.s32.totalorder %s1623_s9, %s1619_s28 }
 0x225   : > { %p1621_p7 = pnand %p1620_p4, %p1738_p5 }
 0x226   : > { %p1626_p11 = por %p1625_p10, %p1624_p9 }
 0x227   : > { %p1622_p8 = pneg %p1621_p7 }
 0x229   : > { %p1627_p12 = pnand %p1626_p11, %p1622_p8 }
 0x22b   : > { %1630 = shalt.err (!%p1627_p12)
}
 0x22c   : > { %s1674_s13 = smov 128  }
 0x22d   : > { %1559 = dma.vmem_to_hbm [thread:$0]  (%p1738_p5), %s2362_s20, 2048, %s2358_s27, %s2369_s19, %s1674_s13, %s1674_s13, %s1669_s11  }
 0x22e PF: > { %p1565_p13 = scmp.ge.s32.totalorder %s1665_s18, 2  ;;  %s1363_s14 = sand.u32 1, %s1653_s15  }
 0x22f   : > { %s1364_s22 = scalar_lea.sflag [#allocation3], %s1363_s14 }
 0x230   : > { %p1562_p0 = pnand %p1565_p13, %p1742_p6 }
 0x232   : > { %p1563_p1 = pneg %p1562_p0 }
 0x234   : > { %1648 = dma.done.wait (%p1563_p1), %s1364_s22, 2048  }
 0x235   : > { %1650 = vsyncadd (%p1563_p1), %s1364_s22, 4294965248  ;;  %p14_p2 = scmp.ge.s32.totalorder %s1725_s21, 4   ;;  %s2417_s15 = smov %s1657_s16 }
 0x236   : > { %s2418_s16 = smov %s1661_s17  ;;  %s2419_s17 = smov %s1736_s24 }
 0x237   : > { %s2420_s18 = smov %s1725_s21  ;;  %16 = sbr.rel (!%p14_p2) target bundleno = 3 (0x3), region = 72 }
 0x23c   :  { %1369 = vsyncpa [#allocation3], 1 }
 0x23d   :  { %1371 = vsyncpa [#allocation3 + $0x1], 1 }

</bundles_post_ra>
